<compile_context>
chip_gen: v5e
topology: v5e:2x2
jax: 0.10.0
libtpu: 0.0.40
codegen_flags: <defaults>
</compile_context>

<pallas_src>
import functools

import numpy as np
import jax
import jax.numpy as jnp
from jax.experimental import pallas as pl
from jax.experimental.pallas import tpu as pltpu


def _round_up(x, m):
    return ((x + m - 1) // m) * m


def _dotf32(a, b):
    return jnp.dot(a, b, preferred_element_type=jnp.float32)


# ----------------------------------------------------------------------------
# Fused Pallas kernel
# ----------------------------------------------------------------------------
def _make_skip_mpn_kernel(*, n_layers, K, N, E, H, in1_pad, a_off, out_dim,
                          tag_stride):
    KH = (K + 1) * H
    bf16 = jnp.bfloat16
    f32 = jnp.float32

    def kernel(x_ref, eattr_ref, gmat_ref, scat_ref, ea_ref, tag_ref, o_ref):
        x_in = x_ref[...]                       # (N, F) f32 — skip-connection input
        x_bf = x_in.astype(bf16)

        # --- EdgeAggregation (PyG MessagePassing, aggr='add') ----------------
        # one fused gather of both endpoints: [x[col]; x[row]] = g_stack @ x
        g_stack = gmat_ref[0:2 * E, :]          # (2E, N) bf16 one-hot
        xg = _dotf32(g_stack, x_bf)             # (2E, F) exact selection
        feat = jnp.concatenate(
            [xg[:E].astype(bf16), xg[E:].astype(bf16), eattr_ref[...]],
            axis=-1)                            # (E, in1_pad) bf16

        w1 = ea_ref[0:in1_pad, :]                               # (in1_pad, H)
        w2 = ea_ref[in1_pad:in1_pad + H, :]                     # (H, H)
        b1 = ea_ref[in1_pad + H:in1_pad + H + 1, :].astype(f32)  # (1, H)
        b2 = ea_ref[in1_pad + H + 1:in1_pad + H + 2, :].astype(f32)

        h = jnp.maximum(_dotf32(feat, w1) + b1, 0.0).astype(bf16)
        msg = (_dotf32(h, w2) + b2).astype(bf16)                # (E, H)
        x = _dotf32(scat_ref[...], msg)         # scatter-add at col -> (N, H) f32
        # (no activation after edge_aggr, matching SkipMPN.forward)

        # --- TAGConv stack ----------------------------------------------------
        a_pows = gmat_ref[a_off:a_off + K * N, :]               # (K*N, N) bf16
        for l in range(n_layers):
            x_bf = x.astype(bf16)                               # (N, H)
            # all K hops in one matmul: [A x; A^2 x; ...; A^K x]
            hks = _dotf32(a_pows, x_bf)                         # (K*N, H)
            h_cat = jnp.concatenate(
                [x_bf] + [hks[k * N:(k + 1) * N].astype(bf16)
                          for k in range(K)],
                axis=-1)                                        # (N, (K+1)*H)
            base = l * tag_stride                               # ref-level slices
            w = tag_ref[base:base + KH, :]                      # ((K+1)*H, H)
            b = tag_ref[base + KH:base + KH + 1, :].astype(f32)  # (1, H)
            out = _dotf32(h_cat, w) + b
            if l < n_layers - 1:
                out = jnp.maximum(out, 0.0)     # dropout: eval-mode identity
            x = out

        # --- skip connection ---------------------------------------------------
        o_ref[...] = x_in + x[:, :out_dim]

    return kernel


# ----------------------------------------------------------------------------
# pallas_call wrapper (single fused call, whole-array VMEM blocks, grid=())
# ----------------------------------------------------------------------------
def skip_mpn_forward(data_x, eattr_pad, gmat, scat, ea_pack, tag_pack, *,
                     nfeature_dim, hidden_dim, output_dim, K, n_layers,
                     num_edges, in1_pad, a_off, tag_stride):
    assert data_x.shape[-1] == 2 * nfeature_dim + 4
    # SkipMPN.forward slicing of data.x (mask slice is unused by the module)
    x = data_x[:, 4:4 + nfeature_dim]
    N = x.shape[0]

    kernel = _make_skip_mpn_kernel(
        n_layers=n_layers, K=K, N=N, E=num_edges, H=hidden_dim,
        in1_pad=in1_pad, a_off=a_off, out_dim=output_dim,
        tag_stride=tag_stride)

    def vmem():
        return pl.BlockSpec(memory_space=pltpu.MemorySpace.VMEM)

    return pl.pallas_call(
        kernel,
        out_shape=jax.ShapeDtypeStruct((N, output_dim), jnp.float32),
        in_specs=[vmem() for _ in range(6)],
        out_specs=vmem(),
    )(x, eattr_pad, gmat, scat, ea_pack, tag_pack)


# ----------------------------------------------------------------------------
# Graph preprocessing (host-side glue, numpy)
# ----------------------------------------------------------------------------
def is_directed(edge_index):
    sel = edge_index[0, :] == edge_index[1, 0]
    return int(edge_index[0, 0]) not in set(edge_index[1, sel].tolist())


def undirect_graph(edge_index, edge_attr):
    if is_directed(edge_index):
        dup = np.stack([edge_index[1, :], edge_index[0, :]], axis=0)
        edge_index = np.concatenate([edge_index, dup], axis=1)
        edge_attr = np.concatenate([edge_attr, edge_attr], axis=0)
    return edge_index, edge_attr


def build_graph_mats(edge_index, num_nodes, K):
    """gmat = [g_col; g_row; pad; A^1 ... A^K] (bf16), scat (bf16), adj (f32)."""
    row, col = edge_index[0], edge_index[1]
    E = edge_index.shape[1]
    eye = np.eye(num_nodes, dtype=np.float32)
    g_col = eye[col]                              # (E, N): gathers x_i = x[col]
    g_row = eye[row]                              # (E, N): gathers x_j = x[row]
    scat = g_col.T.copy()                         # (N, E): scatter-add at col
    # gcn_norm (add_self_loops=False) for TAGConv
    deg = np.zeros((num_nodes,), dtype=np.float32)
    np.add.at(deg, col, 1.0)
    dinv = np.where(deg > 0, deg ** -0.5, 0.0).astype(np.float32)
    adj = np.zeros((num_nodes, num_nodes), dtype=np.float32)
    np.add.at(adj, (col, row), dinv[row] * dinv[col])
    # stacked adjacency powers A^1..A^K -> kills the serial hop chain in-kernel
    pows, a_k = [], np.eye(num_nodes, dtype=np.float32)
    for _ in range(K):
        a_k = adj @ a_k
        pows.append(a_k)
    a_pows = np.concatenate(pows, axis=0)         # (K*N, N)
    a_off = _round_up(2 * E, 8)                   # sublane-aligned start
    gmat = np.zeros((a_off + K * num_nodes, num_nodes), dtype=np.float32)
    gmat[:E] = g_col
    gmat[E:2 * E] = g_row
    gmat[a_off:] = a_pows
    return (jnp.asarray(gmat, jnp.bfloat16), jnp.asarray(scat, jnp.bfloat16),
            adj, a_off)


# ----------------------------------------------------------------------------
# Parameter construction + host-side packing
# ----------------------------------------------------------------------------
def _lin(key, fan_in, fan_out):
    kw, kb = jax.random.split(key)
    w = jax.random.normal(kw, (fan_in, fan_out), jnp.float32) * 0.1
    b = jax.random.normal(kb, (fan_out,), jnp.float32) * 0.1
    return w, b


def make_params(key, nfeature_dim, efeature_dim, output_dim, hidden_dim,
                n_gnn_layers, K):
    n_keys = 2 + (n_gnn_layers + 1) * (K + 2)
    keys = iter(jax.random.split(key, n_keys))

    # EdgeAggregation MLP: Linear(2F+EF, H) -> ReLU -> Linear(H, H)
    w1, b1 = _lin(next(keys), 2 * nfeature_dim + efeature_dim, hidden_dim)
    w2, b2 = _lin(next(keys), hidden_dim, hidden_dim)
    ea = (w1, b1, w2, b2)

    def tag(in_dim, out_dim_):
        ws = jnp.stack([_lin(next(keys), in_dim, out_dim_)[0]
                        for _ in range(K + 1)], axis=0)      # (K+1, in, out)
        bias = jax.random.normal(next(keys), (out_dim_,), jnp.float32) * 0.1
        return ws, bias

    tags = []
    if n_gnn_layers == 1:
        tags.append(tag(hidden_dim, output_dim))
    else:
        tags.append(tag(hidden_dim, hidden_dim))
    for _ in range(n_gnn_layers - 2):
        tags.append(tag(hidden_dim, hidden_dim))
    tags.append(tag(hidden_dim, output_dim))
    return {'ea': ea, 'tag': tags}


def pack_params(params, *, hidden_dim, K):
    """Pack all parameters into two bf16 arrays (cuts DMA count to 6 total)."""
    H = hidden_dim
    w1, b1, w2, b2 = params['ea']
    in1 = w1.shape[0]
    in1_pad = _round_up(in1, 8)
    ea = np.zeros((in1_pad + H + 2, H), np.float32)
    ea[:in1] = np.asarray(w1)
    ea[in1_pad:in1_pad + H] = np.asarray(w2)
    ea[in1_pad + H] = np.asarray(b1)
    ea[in1_pad + H + 1] = np.asarray(b2)

    KH = (K + 1) * H
    stride = _round_up(KH + 1, 8)
    n_layers = len(params['tag'])
    tag = np.zeros((n_layers * stride, H), np.float32)
    for l, (ws, b) in enumerate(params['tag']):
        out_d = ws.shape[2]
        w_flat = np.asarray(ws).reshape(KH, out_d)  # (K+1,H,out)->((K+1)*H,out)
        tag[l * stride:l * stride + KH, :out_d] = w_flat
        tag[l * stride + KH, :out_d] = np.asarray(b)
    return (jnp.asarray(ea, jnp.bfloat16), jnp.asarray(tag, jnp.bfloat16),
            in1_pad, stride)


# ----------------------------------------------------------------------------
# Pure-JAX f32 reference (for validation of the bf16-operand kernel)
# ----------------------------------------------------------------------------
def reference_forward(data_x, edge_attr, edge_index, adj, params, *,
                      nfeature_dim, K):
    x = data_x[:, 4:4 + nfeature_dim]
    x_in = x
    row, col = edge_index
    w1, b1, w2, b2 = params['ea']
    feat = jnp.concatenate([x[col], x[row], edge_attr], axis=-1)
    h = jnp.maximum(feat @ w1 + b1, 0.0)
    msg = h @ w2 + b2
    x = jnp.zeros((x.shape[0], msg.shape[1]), jnp.float32).at[col].add(msg)
    n_layers = len(params['tag'])
    for l, (ws, b) in enumerate(params['tag']):
        hk = x
        y = x @ ws[0] + b
        for k in range(1, K + 1):
            hk = adj @ hk
            y = y + hk @ ws[k]
        if l < n_layers - 1:
            y = jnp.maximum(y, 0.0)
        x = y
    return x_in + x


# ----------------------------------------------------------------------------
# Main
# ----------------------------------------------------------------------------
if __name__ == "__main__":
    nfeature_dim = 4
    efeature_dim = 4
    output_dim = 4          # must equal nfeature_dim for the skip connection
    hidden_dim = 32
    n_gnn_layers = 3
    K = 3
    num_nodes = 16
    assert output_dim == nfeature_dim

    key = jax.random.PRNGKey(0)
    k_x, k_eattr, k_params = jax.random.split(key, 3)

    # data.x: (N, 2*nfeature_dim + 4) — columns [pad(4) | x(F) | mask(F)]
    data_x = jax.random.normal(
        k_x, (num_nodes, 2 * nfeature_dim + 4), jnp.float32)

    # directed ring graph; undirect_graph duplicates edges (as the module does)
    row = np.arange(num_nodes, dtype=np.int32)
    col = (row + 1) % num_nodes
    edge_index = np.stack([row, col], axis=0)
    edge_attr_np = np.asarray(jax.random.normal(
        k_eattr, (edge_index.shape[1], efeature_dim), jnp.float32))
    edge_index, edge_attr_np = undirect_graph(edge_index, edge_attr_np)
    E = edge_index.shape[1]

    gmat, scat, adj, a_off = build_graph_mats(edge_index, num_nodes, K)
    params = make_params(k_params, nfeature_dim, efeature_dim, output_dim,
                         hidden_dim, n_gnn_layers, K)
    n_layers = len(params['tag'])
    ea_pack, tag_pack, in1_pad, tag_stride = pack_params(
        params, hidden_dim=hidden_dim, K=K)

    # edge_attr zero-padded so [x_i | x_j | edge_attr] hits the padded contraction
    ef_pad = in1_pad - 2 * nfeature_dim
    eattr_pad_np = np.zeros((E, ef_pad), np.float32)
    eattr_pad_np[:, :efeature_dim] = edge_attr_np
    eattr_pad = jnp.asarray(eattr_pad_np, jnp.bfloat16)

    fwd = jax.jit(functools.partial(
        skip_mpn_forward, nfeature_dim=nfeature_dim, hidden_dim=hidden_dim,
        output_dim=output_dim, K=K, n_layers=n_layers, num_edges=E,
        in1_pad=in1_pad, a_off=a_off, tag_stride=tag_stride))
    out = jax.block_until_ready(
        fwd(data_x, eattr_pad, gmat, scat, ea_pack, tag_pack))

    assert out.shape == (num_nodes, output_dim)
    assert bool(jnp.all(jnp.isfinite(out)))

    # validate the bf16-operand kernel against a pure-JAX f32 reference
    ref = reference_forward(data_x, jnp.asarray(edge_attr_np, jnp.float32),
                            edge_index, jnp.asarray(adj), params,
                            nfeature_dim=nfeature_dim, K=K)
    max_err = float(jnp.max(jnp.abs(out - ref)))
    assert max_err < 1e-1, f"kernel vs reference max abs err {max_err}"
    print("KERNEL_OK")
</pallas_src>

<mosaic_0001>
module attributes {stable_mosaic.version = 11 : i64} {
  func.func @kernel(%arg0: memref<16x4xf32, #tpu.memory_space<vmem>>, %arg1: memref<32x8xbf16, #tpu.memory_space<vmem>>, %arg2: memref<112x16xbf16, #tpu.memory_space<vmem>>, %arg3: memref<16x32xbf16, #tpu.memory_space<vmem>>, %arg4: memref<50x32xbf16, #tpu.memory_space<vmem>>, %arg5: memref<408x32xbf16, #tpu.memory_space<vmem>>, %arg6: memref<16x4xf32, #tpu.memory_space<vmem>>) attributes {dimension_semantics = [], scalar_prefetch = 0 : i64, scratch_operands = 0 : i64, tpu.core_type = #tpu.core_type<tc>} {
    %c0 = arith.constant 0 : index
    %c0_0 = arith.constant 0 : index
    %0 = vector.load %arg0[%c0, %c0_0] : memref<16x4xf32, #tpu.memory_space<vmem>>, vector<16x4xf32>
    %1 = arith.truncf %0 : vector<16x4xf32> to vector<16x4xbf16>
    %c0_1 = arith.constant 0 : index
    %c0_2 = arith.constant 0 : index
    %2 = vector.load %arg2[%c0_1, %c0_2] : memref<112x16xbf16, #tpu.memory_space<vmem>>, vector<64x16xbf16>
    %cst = arith.constant dense<0.000000e+00> : vector<64x4xf32>
    %3 = tpu.matmul %2, %1, %cst {dimension_numbers = #tpu.dot_dimension_numbers<[1], [0], [0], [1], [0, 0, 1, 1], [], []>} : vector<64x16xbf16>, vector<16x4xbf16>, vector<64x4xf32> -> vector<64x4xf32>
    %4 = vector.extract_strided_slice %3 {offsets = [0, 0], sizes = [32, 4], strides = [1, 1]} : vector<64x4xf32> to vector<32x4xf32>
    %5 = arith.truncf %4 : vector<32x4xf32> to vector<32x4xbf16>
    %6 = vector.extract_strided_slice %3 {offsets = [32, 0], sizes = [32, 4], strides = [1, 1]} : vector<64x4xf32> to vector<32x4xf32>
    %7 = arith.truncf %6 : vector<32x4xf32> to vector<32x4xbf16>
    %c0_3 = arith.constant 0 : index
    %c0_4 = arith.constant 0 : index
    %8 = vector.load %arg1[%c0_3, %c0_4] : memref<32x8xbf16, #tpu.memory_space<vmem>>, vector<32x8xbf16>
    %9 = tpu.concatenate %5, %7, %8 in 1 : vector<32x4xbf16>, vector<32x4xbf16>, vector<32x8xbf16> -> vector<32x16xbf16>
    %c0_5 = arith.constant 0 : index
    %c0_6 = arith.constant 0 : index
    %10 = vector.load %arg4[%c0_5, %c0_6] : memref<50x32xbf16, #tpu.memory_space<vmem>>, vector<16x32xbf16>
    %c16 = arith.constant 16 : index
    %c0_7 = arith.constant 0 : index
    %11 = vector.load %arg4[%c16, %c0_7] : memref<50x32xbf16, #tpu.memory_space<vmem>>, vector<32x32xbf16>
    %c48 = arith.constant 48 : index
    %c0_8 = arith.constant 0 : index
    %12 = vector.load %arg4[%c48, %c0_8] : memref<50x32xbf16, #tpu.memory_space<vmem>>, vector<1x32xbf16>
    %13 = arith.extf %12 : vector<1x32xbf16> to vector<1x32xf32>
    %c49 = arith.constant 49 : index
    %c0_9 = arith.constant 0 : index
    %14 = vector.load %arg4[%c49, %c0_9] : memref<50x32xbf16, #tpu.memory_space<vmem>>, vector<1x32xbf16>
    %15 = arith.extf %14 : vector<1x32xbf16> to vector<1x32xf32>
    %cst_10 = arith.constant dense<0.000000e+00> : vector<32x32xf32>
    %16 = tpu.matmul %9, %10, %cst_10 {dimension_numbers = #tpu.dot_dimension_numbers<[1], [0], [0], [1], [0, 0, 1, 1], [], []>} : vector<32x16xbf16>, vector<16x32xbf16>, vector<32x32xf32> -> vector<32x32xf32>
    %17 = vector.broadcast %13 : vector<1x32xf32> to vector<32x32xf32>
    %18 = arith.addf %16, %17 : vector<32x32xf32>
    %cst_11 = arith.constant 0.000000e+00 : f32
    %19 = vector.broadcast %cst_11 : f32 to vector<32x32xf32>
    %20 = arith.maximumf %18, %19 : vector<32x32xf32>
    %21 = arith.truncf %20 : vector<32x32xf32> to vector<32x32xbf16>
    %cst_12 = arith.constant dense<0.000000e+00> : vector<32x32xf32>
    %22 = tpu.matmul %21, %11, %cst_12 {dimension_numbers = #tpu.dot_dimension_numbers<[1], [0], [0], [1], [0, 0, 1, 1], [], []>} : vector<32x32xbf16>, vector<32x32xbf16>, vector<32x32xf32> -> vector<32x32xf32>
    %23 = vector.broadcast %15 : vector<1x32xf32> to vector<32x32xf32>
    %24 = arith.addf %22, %23 : vector<32x32xf32>
    %25 = arith.truncf %24 : vector<32x32xf32> to vector<32x32xbf16>
    %c0_13 = arith.constant 0 : index
    %c0_14 = arith.constant 0 : index
    %26 = vector.load %arg3[%c0_13, %c0_14] : memref<16x32xbf16, #tpu.memory_space<vmem>>, vector<16x32xbf16>
    %cst_15 = arith.constant dense<0.000000e+00> : vector<16x32xf32>
    %27 = tpu.matmul %26, %25, %cst_15 {dimension_numbers = #tpu.dot_dimension_numbers<[1], [0], [0], [1], [0, 0, 1, 1], [], []>} : vector<16x32xbf16>, vector<32x32xbf16>, vector<16x32xf32> -> vector<16x32xf32>
    %c64 = arith.constant 64 : index
    %c0_16 = arith.constant 0 : index
    %28 = vector.load %arg2[%c64, %c0_16] : memref<112x16xbf16, #tpu.memory_space<vmem>>, vector<48x16xbf16>
    %29 = arith.truncf %27 : vector<16x32xf32> to vector<16x32xbf16>
    %cst_17 = arith.constant dense<0.000000e+00> : vector<48x32xf32>
    %30 = tpu.matmul %28, %29, %cst_17 {dimension_numbers = #tpu.dot_dimension_numbers<[1], [0], [0], [1], [0, 0, 1, 1], [], []>} : vector<48x16xbf16>, vector<16x32xbf16>, vector<48x32xf32> -> vector<48x32xf32>
    %31 = vector.extract_strided_slice %30 {offsets = [0, 0], sizes = [16, 32], strides = [1, 1]} : vector<48x32xf32> to vector<16x32xf32>
    %32 = arith.truncf %31 : vector<16x32xf32> to vector<16x32xbf16>
    %33 = vector.extract_strided_slice %30 {offsets = [16, 0], sizes = [16, 32], strides = [1, 1]} : vector<48x32xf32> to vector<16x32xf32>
    %34 = arith.truncf %33 : vector<16x32xf32> to vector<16x32xbf16>
    %35 = vector.extract_strided_slice %30 {offsets = [32, 0], sizes = [16, 32], strides = [1, 1]} : vector<48x32xf32> to vector<16x32xf32>
    %36 = arith.truncf %35 : vector<16x32xf32> to vector<16x32xbf16>
    %37 = tpu.concatenate %29, %32, %34, %36 in 1 : vector<16x32xbf16>, vector<16x32xbf16>, vector<16x32xbf16>, vector<16x32xbf16> -> vector<16x128xbf16>
    %c0_18 = arith.constant 0 : index
    %c0_19 = arith.constant 0 : index
    %38 = vector.load %arg5[%c0_18, %c0_19] : memref<408x32xbf16, #tpu.memory_space<vmem>>, vector<128x32xbf16>
    %c128 = arith.constant 128 : index
    %c0_20 = arith.constant 0 : index
    %39 = vector.load %arg5[%c128, %c0_20] : memref<408x32xbf16, #tpu.memory_space<vmem>>, vector<1x32xbf16>
    %40 = arith.extf %39 : vector<1x32xbf16> to vector<1x32xf32>
    %cst_21 = arith.constant dense<0.000000e+00> : vector<16x32xf32>
    %41 = tpu.matmul %37, %38, %cst_21 {dimension_numbers = #tpu.dot_dimension_numbers<[1], [0], [0], [1], [0, 0, 1, 1], [], []>} : vector<16x128xbf16>, vector<128x32xbf16>, vector<16x32xf32> -> vector<16x32xf32>
    %42 = vector.broadcast %40 : vector<1x32xf32> to vector<16x32xf32>
    %43 = arith.addf %41, %42 : vector<16x32xf32>
    %cst_22 = arith.constant 0.000000e+00 : f32
    %44 = vector.broadcast %cst_22 : f32 to vector<16x32xf32>
    %45 = arith.maximumf %43, %44 : vector<16x32xf32>
    %46 = arith.truncf %45 : vector<16x32xf32> to vector<16x32xbf16>
    %cst_23 = arith.constant dense<0.000000e+00> : vector<48x32xf32>
    %47 = tpu.matmul %28, %46, %cst_23 {dimension_numbers = #tpu.dot_dimension_numbers<[1], [0], [0], [1], [0, 0, 1, 1], [], []>} : vector<48x16xbf16>, vector<16x32xbf16>, vector<48x32xf32> -> vector<48x32xf32>
    %48 = vector.extract_strided_slice %47 {offsets = [0, 0], sizes = [16, 32], strides = [1, 1]} : vector<48x32xf32> to vector<16x32xf32>
    %49 = arith.truncf %48 : vector<16x32xf32> to vector<16x32xbf16>
    %50 = vector.extract_strided_slice %47 {offsets = [16, 0], sizes = [16, 32], strides = [1, 1]} : vector<48x32xf32> to vector<16x32xf32>
    %51 = arith.truncf %50 : vector<16x32xf32> to vector<16x32xbf16>
    %52 = vector.extract_strided_slice %47 {offsets = [32, 0], sizes = [16, 32], strides = [1, 1]} : vector<48x32xf32> to vector<16x32xf32>
    %53 = arith.truncf %52 : vector<16x32xf32> to vector<16x32xbf16>
    %54 = tpu.concatenate %46, %49, %51, %53 in 1 : vector<16x32xbf16>, vector<16x32xbf16>, vector<16x32xbf16>, vector<16x32xbf16> -> vector<16x128xbf16>
    %c136 = arith.constant 136 : index
    %c0_24 = arith.constant 0 : index
    %55 = vector.load %arg5[%c136, %c0_24] : memref<408x32xbf16, #tpu.memory_space<vmem>>, vector<128x32xbf16>
    %c264 = arith.constant 264 : index
    %c0_25 = arith.constant 0 : index
    %56 = vector.load %arg5[%c264, %c0_25] : memref<408x32xbf16, #tpu.memory_space<vmem>>, vector<1x32xbf16>
    %57 = arith.extf %56 : vector<1x32xbf16> to vector<1x32xf32>
    %cst_26 = arith.constant dense<0.000000e+00> : vector<16x32xf32>
    %58 = tpu.matmul %54, %55, %cst_26 {dimension_numbers = #tpu.dot_dimension_numbers<[1], [0], [0], [1], [0, 0, 1, 1], [], []>} : vector<16x128xbf16>, vector<128x32xbf16>, vector<16x32xf32> -> vector<16x32xf32>
    %59 = vector.broadcast %57 : vector<1x32xf32> to vector<16x32xf32>
    %60 = arith.addf %58, %59 : vector<16x32xf32>
    %cst_27 = arith.constant 0.000000e+00 : f32
    %61 = vector.broadcast %cst_27 : f32 to vector<16x32xf32>
    %62 = arith.maximumf %60, %61 : vector<16x32xf32>
    %63 = arith.truncf %62 : vector<16x32xf32> to vector<16x32xbf16>
    %cst_28 = arith.constant dense<0.000000e+00> : vector<48x32xf32>
    %64 = tpu.matmul %28, %63, %cst_28 {dimension_numbers = #tpu.dot_dimension_numbers<[1], [0], [0], [1], [0, 0, 1, 1], [], []>} : vector<48x16xbf16>, vector<16x32xbf16>, vector<48x32xf32> -> vector<48x32xf32>
    %65 = vector.extract_strided_slice %64 {offsets = [0, 0], sizes = [16, 32], strides = [1, 1]} : vector<48x32xf32> to vector<16x32xf32>
    %66 = arith.truncf %65 : vector<16x32xf32> to vector<16x32xbf16>
    %67 = vector.extract_strided_slice %64 {offsets = [16, 0], sizes = [16, 32], strides = [1, 1]} : vector<48x32xf32> to vector<16x32xf32>
    %68 = arith.truncf %67 : vector<16x32xf32> to vector<16x32xbf16>
    %69 = vector.extract_strided_slice %64 {offsets = [32, 0], sizes = [16, 32], strides = [1, 1]} : vector<48x32xf32> to vector<16x32xf32>
    %70 = arith.truncf %69 : vector<16x32xf32> to vector<16x32xbf16>
    %71 = tpu.concatenate %63, %66, %68, %70 in 1 : vector<16x32xbf16>, vector<16x32xbf16>, vector<16x32xbf16>, vector<16x32xbf16> -> vector<16x128xbf16>
    %c272 = arith.constant 272 : index
    %c0_29 = arith.constant 0 : index
    %72 = vector.load %arg5[%c272, %c0_29] : memref<408x32xbf16, #tpu.memory_space<vmem>>, vector<128x32xbf16>
    %c400 = arith.constant 400 : index
    %c0_30 = arith.constant 0 : index
    %73 = vector.load %arg5[%c400, %c0_30] : memref<408x32xbf16, #tpu.memory_space<vmem>>, vector<1x32xbf16>
    %74 = arith.extf %73 : vector<1x32xbf16> to vector<1x32xf32>
    %cst_31 = arith.constant dense<0.000000e+00> : vector<16x32xf32>
    %75 = tpu.matmul %71, %72, %cst_31 {dimension_numbers = #tpu.dot_dimension_numbers<[1], [0], [0], [1], [0, 0, 1, 1], [], []>} : vector<16x128xbf16>, vector<128x32xbf16>, vector<16x32xf32> -> vector<16x32xf32>
    %76 = vector.broadcast %74 : vector<1x32xf32> to vector<16x32xf32>
    %77 = arith.addf %75, %76 : vector<16x32xf32>
    %78 = vector.extract_strided_slice %77 {offsets = [0, 0], sizes = [16, 4], strides = [1, 1]} : vector<16x32xf32> to vector<16x4xf32>
    %79 = arith.addf %0, %78 : vector<16x4xf32>
    %c0_32 = arith.constant 0 : index
    %c0_33 = arith.constant 0 : index
    %80 = vector.load %arg6[%c0_32, %c0_33] : memref<16x4xf32, #tpu.memory_space<vmem>>, vector<16x4xf32>
    tpu.vector_store %arg6[%c0_32, %c0_33], %79 {strides = array<i32>} : memref<16x4xf32, #tpu.memory_space<vmem>>, vector<16x4xf32>,
    return
  }
}

</mosaic_0001>

<bundles_post_ra>
// kernel: skip_mpn_forward.1
= control target key start
LH: loop header
LB: loop body
LE: loop exit
PB: predicated region body
PF: predicated region fallthrough
CT: control target
= control target key end

     0   :  { %vm55_vm0 = vcmask 130048   ;;  %s964_s8 = smov 4   ;;  %s965_s11 = smov 8   ;;  %vm147_vm1 = vcmask 31744   ;;  %vm154_vm2 = vcmask 64512   ;;  %vm216_vm3 = vcmask 261120   ;;  %s1202_s0 = inlined_call_operand.vmem [shape: f32[16,4], index: 0, kind: input, shape index: {}]   ;;  %s1203_s2 = inlined_call_operand.vmem [shape: bf16[112,16], index: 2, kind: input, shape index: {}]   ;;  %s1204_s1 = inlined_call_operand.vmem [shape: bf16[32,8], index: 1, kind: input, shape index: {}]   ;;  %s1205_s4 = inlined_call_operand.vmem [shape: bf16[50,32], index: 4, kind: input, shape index: {}]   ;;  %s1206_s3 = inlined_call_operand.vmem [shape: bf16[16,32], index: 3, kind: input, shape index: {}]   ;;  %s1207_s5 = inlined_call_operand.vmem [shape: bf16[408,32], index: 5, kind: input, shape index: {}]   ;;  %s1208_s6 = inlined_call_operand.vmem [shape: f32[16,4], index: 6, kind: output, shape index: {}]  }
   0x1   :  { %v1007_v0 = vld [vmem:[%s1202_s0] sm:$0xff]  ;;  %v1012_v1 = vld [vmem:[%s1202_s0 + $0x8] sm:$0xff]  ;;  %v924_v5 = vld [vmem:[%s1203_s2 + $0x10] sm:$0xff]  ;;  %s966_s27 = smov 32   ;;  %s968_s28 = smov 96   ;;  %vm360_vm4 = vcmask 523264  }
   0x2   :  { %v26_v2 = vpack.c.bf16 %v1012_v1, %v1007_v0  ;;  %v922_v3 = vld [vmem:[%s1203_s2] sm:$0xff]  ;;  %v923_v4 = vld [vmem:[%s1203_s2 + $0x8] sm:$0xff]  ;;  %v925_v6 = vld [vmem:[%s1203_s2 + $0x18] sm:$0xff]  ;;  %vm363_vm5 = vcmask 785408  }
   0x3   :  { %v926_v29 = vld [vmem:[%s1204_s1] sm:$0xff]  ;;  %v927_v36 = vld [vmem:[%s1204_s1 + $0x8] sm:$0xff]  ;;  %v930_v46 = vld [vmem:[%s1205_s4 + $0x10] sm:$0xff] }
   0x4   :  { %75 = vmatpush.bf16.msra.mxu0 %v26_v2  ;;  %v928_v37 = vld [vmem:[%s1205_s4] sm:$0xff]  ;;  %229 = vmatpush.bf16.msra.mxu2 %v930_v46  ;;  %v929_v47 = vld [vmem:[%s1205_s4 + $0x8] sm:$0xff]  ;;  %v165_v48 = vld [vmem:[%s1205_s4 + $0x18] sm:$0x1] }
   0x5   :  { %185 = vmatpush.bf16.msra.mxu1 %v928_v37  ;;  %v166_v49 = vunpack.c.l.bf16 %v165_v48  ;;  %v942_v46 = vld [vmem:[%s1207_s5 + $0x38] sm:$0xff]  ;;  %v940_v48 = vld [vmem:[%s1207_s5 + $0x28] sm:$0xff] }
   0x7   :  { %772 = vmatmul.msk.bf16.vlgmr.msra.gmra.mxu0 %vm55_vm0, %v922_v3  ;;  %v167_v51 = vperm.slane %v166_v49, 0 }
   0x8   :  { %230 = vmatpush.bf16.msra.mxu2 %v929_v47  ;;  %v941_v47 = vld [vmem:[%s1207_s5 + $0x30] sm:$0xff] }
   0x9   :  { %434 = vmatpush.bf16.msrb.mxu1 %v942_v46 }
   0xd   :  { %435 = vmatpush.bf16.msrb.mxu1 %v941_v47 }
  0x11   :  { %436 = vmatpush.bf16.msrb.mxu1 %v940_v48 }
  0x17   :  { %773 = vmatmul.msk.bf16.gmra.mxu0 %vm55_vm0, %v923_v4 }
  0x27   :  { %774 = vmatmul.msk.bf16.gmra.mxu0 %vm55_vm0, %v924_v5 }
  0x37   :  { %775 = vmatmul.msk.bf16.gmra.mxu0 %vm55_vm0, %v925_v6  ;;  %v203_v6 = vperm.slane %v166_v49, 1  ;;  %v939_v49 = vld [vmem:[%s1207_s5 + $0x20] sm:$0xff] }
  0x38   :  { %437 = vmatpush.bf16.msrb.mxu1 %v939_v49 }
  0x84   :  { %v77_v7 = vpop.f32.mrf.mxu0 }
  0x85   :  { %v97_v8 = vpack.c.bf16 %v77_v7, %v77_v7 }
  0x87   :  { %v113_v11 = vunpack.c.l.b16 %v97_v8 }
  0x8c   :  { %v79_v9 = vpop.f32.mrf.mxu0 }
  0x8d   :  { %v98_v10 = vpack.c.bf16 %v79_v9, %v79_v9 }
  0x8f   :  { %v114_v12 = vunpack.c.l.b16 %v98_v10 }
  0x91   :  { %v117_v13 = vpack.c.b16 %v114_v12, %v113_v11 }
  0x94   :  { %v82_v14 = vpop.f32.mrf.mxu0 }
  0x95   :  { %v99_v15 = vpack.c.bf16 %v82_v14, %v82_v14  ;;  %v931_v14 = vld [vmem:[%s1206_s3] sm:$0xff] }
  0x97   :  { %v115_v18 = vunpack.c.l.b16 %v99_v15 }
  0x9c   :  { %v84_v16 = vpop.f32.mrf.mxu0 }
  0x9d   :  { %v100_v17 = vpack.c.bf16 %v84_v16, %v84_v16 }
  0x9f   :  { %v116_v19 = vunpack.c.l.b16 %v100_v17 }
  0xa1   :  { %v118_v20 = vpack.c.b16 %v116_v19, %v115_v18 }
  0xa4   :  { %v87_v21 = vpop.f32.mrf.mxu0 }
  0xa5   :  { %v101_v22 = vpack.c.bf16 %v87_v21, %v87_v21 }
  0xa7   :  { %v123_v25 = vunpack.c.l.b16 %v101_v22  ;;  %v1063_v22 = vld [vmem:[%s1203_s2 + $0x20] sm:$0xff] }
  0xac   :  { %v89_v23 = vpop.f32.mrf.mxu0 }
  0xad   :  { %v102_v24 = vpack.c.bf16 %v89_v23, %v89_v23  ;;  %v1070_v23 = vld [vmem:[%s1203_s2 + $0x28] sm:$0xff] }
  0xaf   :  { %v124_v26 = vunpack.c.l.b16 %v102_v24  ;;  %v1077_v24 = vld [vmem:[%s1203_s2 + $0x30] sm:$0xff]  ;;  %s967_s2 = smov 64  }
  0xb1   :  { %v127_v27 = vpack.c.b16 %v124_v26, %v123_v25 }
  0xb3   :  { %129 = vrot.lane.b32.xlu0 %v127_v27, %s964_s8 }
  0xb4   :  { %v92_v28 = vpop.f32.mrf.mxu0 }
  0xb5   :  { %v103_v30 = vpack.c.bf16 %v92_v28, %v92_v28 }
  0xb7   :  { %v125_v33 = vunpack.c.l.b16 %v103_v30 }
  0xbb   :  { %143 = vrot.lane.b32.xlu0 %v926_v29, %s965_s11 }
  0xbc   :  { %v94_v31 = vpop.f32.mrf.mxu0 }
  0xbd   :  { %v104_v32 = vpack.c.bf16 %v94_v31, %v94_v31 }
  0xbf   :  { %v126_v34 = vunpack.c.l.b16 %v104_v32 }
  0xc1   :  { %v128_v35 = vpack.c.b16 %v126_v34, %v125_v33 }
  0xc3   :  { %131 = vrot.lane.b32.xlu1 %v128_v35, %s964_s8 }
  0xcb   :  { %145 = vrot.lane.b32.xlu1 %v927_v36, %s965_s11 }
 0x125   :  { %v130_v38 = vpop.permute.xlu0 %129 }
 0x126   :  { %v150_v39 = vsel %vm147_vm1, %v117_v13, %v130_v38 }
 0x12d   :  { %v144_v40 = vpop.permute.xlu0 %143 }
 0x12e   :  { %v156_v41 = vsel %vm154_vm2, %v150_v39, %v144_v40 }
 0x12f   :  { %788 = vmatmul.msk.bf16.vlgmr.msra.gmra.mxu1 %vm55_vm0, %v156_v41 }
 0x135   :  { %v132_v42 = vpop.permute.xlu1 %131 }
 0x136   :  { %v153_v43 = vsel %vm147_vm1, %v118_v20, %v132_v42 }
 0x13d   :  { %v146_v44 = vpop.permute.xlu1 %145 }
 0x13e   :  { %v158_v45 = vsel %vm154_vm2, %v153_v43, %v146_v44 }
 0x13f   :  { %789 = vmatmul.msk.bf16.gmra.mxu1 %vm55_vm0, %v158_v45 }
 0x1ac   :  { %v187_v50 = vpop.f32.mrf.mxu1 }
 0x1ad   :  { %v188_v52 = vadd.f32 %v187_v50, %v167_v51  ;;  %v938_v50 = vld [vmem:[%s1207_s5 + $0x18] sm:$0xff] }
 0x1ae   :  { %438 = vmatpush.bf16.msrb.mxu1 %v938_v50  ;;  %v533_v50 = vld [vmem:[%s1207_s5 + $0x84] sm:$0x1] }
 0x1af   :  { %v197_v55 = vmax.f32 %v188_v52, 0.0  ;;  %v936_v52 = vld [vmem:[%s1207_s5 + $0x8] sm:$0xff] }
 0x1b4   :  { %v189_v53 = vpop.f32.mrf.mxu1 }
 0x1b5   :  { %v190_v54 = vadd.f32 %v189_v53, %v167_v51  ;;  %v935_v53 = vld [vmem:[%s1207_s5] sm:$0xff] }
 0x1b7   :  { %v198_v56 = vmax.f32 %v190_v54, 0.0 }
 0x1b9   :  { %v201_v57 = vpack.c.bf16 %v198_v56, %v197_v55 }
 0x1bb   :  { %798 = vmatmul.msk.bf16.vlgmr.msra.gmra.mxu2 %vm216_vm3, %v201_v57 }
 0x1bc   :  { %v192_v58 = vpop.f32.mrf.mxu1 }
 0x1bd   :  { %v193_v59 = vadd.f32 %v192_v58, %v167_v51 }
 0x1bf   :  { %v199_v62 = vmax.f32 %v193_v59, 0.0 }
 0x1c4   :  { %v194_v60 = vpop.f32.mrf.mxu1 }
 0x1c5   :  { %v195_v61 = vadd.f32 %v194_v60, %v167_v51  ;;  %v937_v51 = vld [vmem:[%s1207_s5 + $0x10] sm:$0xff]  ;;  %v383_v60 = vld [vmem:[%s1207_s5 + $0x40] sm:$0x1] }
 0x1c6   :  { %439 = vmatpush.bf16.msrb.mxu1 %v937_v51  ;;  %v534_v51 = vunpack.c.l.bf16 %v533_v50 }
 0x1c7   :  { %v200_v63 = vmax.f32 %v195_v61, 0.0  ;;  %v384_v61 = vunpack.c.l.bf16 %v383_v60 }
 0x1c9   :  { %v202_v2 = vpack.c.bf16 %v200_v63, %v199_v62  ;;  %v385_v62 = vperm.slane %v384_v61, 0 }
 0x1ca   :  { %440 = vmatpush.bf16.msrb.mxu1 %v936_v52  ;;  %v535_v52 = vperm.slane %v534_v51, 0 }
 0x1cb   :  { %799 = vmatmul.msk.bf16.gmra.mxu2 %vm216_vm3, %v202_v2 }
 0x1ce   :  { %441 = vmatpush.bf16.msrb.mxu1 %v935_v53 }
 0x23e   :  { %v232_v3 = vpop.f32.mrf.mxu2 }
 0x23f   :  { %v233_v12 = vadd.f32 %v232_v3, %v203_v6 }
 0x246   :  { %v234_v4 = vpop.f32.mrf.mxu2 }
 0x247   :  { %v235_v10 = vadd.f32 %v234_v4, %v203_v6 }
 0x249   :  { %v242_v13 = vpack.c.bf16 %v235_v10, %v233_v12 }
 0x24e   :  { %v237_v5 = vpop.f32.mrf.mxu2 }
 0x24f   :  { %v238_v8 = vadd.f32 %v237_v5, %v203_v6 }
 0x256   :  { %v239_v7 = vpop.f32.mrf.mxu2 }
 0x257   :  { %v240_v9 = vadd.f32 %v239_v7, %v203_v6 }
 0x259   :  { %v243_v11 = vpack.c.bf16 %v240_v9, %v238_v8 }
 0x25b   :  { %260 = vmatpush.bf16.msra.mxu3 %v243_v11 }
 0x25f   :  { %261 = vmatpush.bf16.msra.mxu3 %v242_v13 }
 0x262   :  { %804 = vmatmul.msk.bf16.vlgmr.msra.gmra.mxu3 %vm216_vm3, %v931_v14 }
 0x2e5   :  { %v263_v15 = vpop.f32.mrf.mxu3 }
 0x2e6   :  { %v274_v16 = vpack.c.bf16 %v263_v15, %v263_v15 }
 0x2e8   :  { %v293_v19 = vunpack.c.l.b16 %v274_v16 }
 0x2ed   :  { %v265_v17 = vpop.f32.mrf.mxu3 }
 0x2ee   :  { %v275_v18 = vpack.c.bf16 %v265_v17, %v265_v17 }
 0x2f0   :  { %v294_v20 = vunpack.c.l.b16 %v275_v18 }
 0x2f2   :  { %v295_v21 = vpack.c.b16 %v294_v20, %v293_v19  ;;  %v950_v19 = vld [vmem:[%s1207_s5 + $0x7c] sm:$0xff] }
 0x2f3   :  { %584 = vmatpush.bf16.msrb.mxu0 %v950_v19 }
 0x2f4   :  { %313 = vmatpush.bf16.msrb.mxu3 %v295_v21 }
 0x2f7   :  { %817 = vmatmul.msk.bf16.vlgmr.msrb.gmra.mxu3 %vm55_vm0, %v1063_v22 }
 0x307   :  { %818 = vmatmul.msk.bf16.gmra.mxu3 %vm55_vm0, %v1070_v23 }
 0x317   :  { %819 = vmatmul.msk.bf16.gmra.mxu3 %vm55_vm0, %v1077_v24 }
 0x37a   :  { %v315_v25 = vpop.f32.mrf.mxu3 }
 0x37b   :  { %v330_v26 = vpack.c.bf16 %v315_v25, %v315_v25 }
 0x37d   :  { %v338_v29 = vunpack.c.l.b16 %v330_v26 }
 0x382   :  { %v317_v27 = vpop.f32.mrf.mxu3 }
 0x383   :  { %v331_v28 = vpack.c.bf16 %v317_v27, %v317_v27 }
 0x385   :  { %v339_v30 = vunpack.c.l.b16 %v331_v28 }
 0x387   :  { %v340_v31 = vpack.c.b16 %v339_v30, %v338_v29 }
 0x389   :  { %341 = vrot.lane.b32.xlu2 %v340_v31, %s966_s27 }
 0x38a   :  { %v320_v32 = vpop.f32.mrf.mxu3 }
 0x38b   :  { %v332_v33 = vpack.c.bf16 %v320_v32, %v320_v32 }
 0x38d   :  { %v345_v36 = vunpack.c.l.b16 %v332_v33 }
 0x392   :  { %v322_v34 = vpop.f32.mrf.mxu3 }
 0x393   :  { %v333_v35 = vpack.c.bf16 %v322_v34, %v322_v34 }
 0x395   :  { %v346_v37 = vunpack.c.l.b16 %v333_v35 }
 0x397   :  { %v347_v38 = vpack.c.b16 %v346_v37, %v345_v36  ;;  %v949_v37 = vld [vmem:[%s1207_s5 + $0x74] sm:$0xff] }
 0x398   :  { %585 = vmatpush.bf16.msrb.mxu0 %v949_v37  ;;  %v683_v37 = vld [vmem:[%s1207_s5 + $0xc8] sm:$0x1] }
 0x399   :  { %348 = vrot.lane.b32.xlu2 %v347_v38, %s967_s2  ;;  %v948_v38 = vld [vmem:[%s1207_s5 + $0x6c] sm:$0xff] }
 0x39a   :  { %v325_v39 = vpop.f32.mrf.mxu3 }
 0x39b   :  { %v334_v40 = vpack.c.bf16 %v325_v39, %v325_v39  ;;  %v947_v39 = vld [vmem:[%s1207_s5 + $0x64] sm:$0xff] }
 0x39c   :  { %586 = vmatpush.bf16.msrb.mxu0 %v948_v38  ;;  %v684_v38 = vunpack.c.l.bf16 %v683_v37 }
 0x39d   :  { %v352_v43 = vunpack.c.l.b16 %v334_v40  ;;  %v946_v40 = vld [vmem:[%s1207_s5 + $0x5c] sm:$0xff] }
 0x3a0   :  { %587 = vmatpush.bf16.msrb.mxu0 %v947_v39  ;;  %v685_v39 = vperm.slane %v684_v38, 0 }
 0x3a2   :  { %v327_v41 = vpop.f32.mrf.mxu3 }
 0x3a3   :  { %v335_v42 = vpack.c.bf16 %v327_v41, %v327_v41  ;;  %v945_v41 = vld [vmem:[%s1207_s5 + $0x54] sm:$0xff] }
 0x3a4   :  { %588 = vmatpush.bf16.msrb.mxu0 %v946_v40 }
 0x3a5   :  { %v353_v44 = vunpack.c.l.b16 %v335_v42  ;;  %v944_v42 = vld [vmem:[%s1207_s5 + $0x4c] sm:$0xff] }
 0x3a7   :  { %v354_v45 = vpack.c.b16 %v353_v44, %v352_v43  ;;  %v943_v43 = vld [vmem:[%s1207_s5 + $0x44] sm:$0xff] }
 0x3a8   :  { %589 = vmatpush.bf16.msrb.mxu0 %v945_v41 }
 0x3a9   :  { %355 = vrot.lane.b32.xlu0 %v354_v45, %s968_s28 }
 0x3ac   :  { %590 = vmatpush.bf16.msrb.mxu0 %v944_v42 }
 0x3b0   :  { %591 = vmatpush.bf16.msrb.mxu0 %v943_v43 }
 0x3e3   :  { %v342_v54 = vpop.permute.xlu2 %341 }
 0x3e4   :  { %v359_v56 = vsel %vm216_vm3, %v295_v21, %v342_v54 }
 0x3f3   :  { %v349_v55 = vpop.permute.xlu2 %348 }
 0x3f4   :  { %v362_v57 = vsel %vm360_vm4, %v359_v56, %v349_v55 }
 0x41b   :  { %v356_v58 = vpop.permute.xlu0 %355 }
 0x41c   :  { %v365_v59 = vsel %vm363_vm5, %v362_v57, %v356_v58 }
 0x41d   :  { %442 = vmatmul.bf16.vlgmr.msrb.gmra.mxu1 %v365_v59 }
 0x49a   :  { %v443_v63 = vpop.f32.mrf.mxu1 }
 0x49b   :  { %v444_v2 = vadd.f32 %v443_v63, %v385_v62 }
 0x49d   :  { %v448_v3 = vmax.f32 %v444_v2, 0.0 }
 0x49f   :  { %v450_v6 = vpack.c.bf16 %v448_v3, %v448_v3 }
 0x4a1   :  { %v454_v9 = vunpack.c.l.b16 %v450_v6 }
 0x4a2   :  { %v445_v4 = vpop.f32.mrf.mxu1 }
 0x4a3   :  { %v446_v5 = vadd.f32 %v445_v4, %v385_v62 }
 0x4a5   :  { %v449_v7 = vmax.f32 %v446_v5, 0.0 }
 0x4a7   :  { %v451_v8 = vpack.c.bf16 %v449_v7, %v449_v7 }
 0x4a9   :  { %v455_v10 = vunpack.c.l.b16 %v451_v8 }
 0x4ab   :  { %v456_v11 = vpack.c.b16 %v455_v10, %v454_v9 }
 0x4ad   :  { %465 = vmatpush.bf16.msrb.mxu2 %v456_v11 }
 0x4b0   :  { %852 = vmatmul.msk.bf16.vlgmr.msrb.gmra.mxu2 %vm55_vm0, %v1063_v22 }
 0x4c0   :  { %853 = vmatmul.msk.bf16.gmra.mxu2 %vm55_vm0, %v1070_v23 }
 0x4d0   :  { %854 = vmatmul.msk.bf16.gmra.mxu2 %vm55_vm0, %v1077_v24 }
 0x533   :  { %v467_v12 = vpop.f32.mrf.mxu2 }
 0x534   :  { %v482_v13 = vpack.c.bf16 %v467_v12, %v467_v12 }
 0x536   :  { %v490_v16 = vunpack.c.l.b16 %v482_v13 }
 0x53b   :  { %v469_v14 = vpop.f32.mrf.mxu2 }
 0x53c   :  { %v483_v15 = vpack.c.bf16 %v469_v14, %v469_v14 }
 0x53e   :  { %v491_v17 = vunpack.c.l.b16 %v483_v15 }
 0x540   :  { %v492_v18 = vpack.c.b16 %v491_v17, %v490_v16 }
 0x542   :  { %493 = vrot.lane.b32.xlu1 %v492_v18, %s966_s27 }
 0x543   :  { %v472_v20 = vpop.f32.mrf.mxu2 }
 0x544   :  { %v484_v21 = vpack.c.bf16 %v472_v20, %v472_v20  ;;  %v958_v20 = vld [vmem:[%s1207_s5 + $0xc0] sm:$0xff] }
 0x545   :  { %734 = vmatpush.bf16.msra.mxu3 %v958_v20 }
 0x546   :  { %v497_v27 = vunpack.c.l.b16 %v484_v21  ;;  %v957_v21 = vld [vmem:[%s1207_s5 + $0xb8] sm:$0xff] }
 0x549   :  { %735 = vmatpush.bf16.msra.mxu3 %v957_v21 }
 0x54b   :  { %v474_v25 = vpop.f32.mrf.mxu2 }
 0x54c   :  { %v485_v26 = vpack.c.bf16 %v474_v25, %v474_v25  ;;  %v956_v25 = vld [vmem:[%s1207_s5 + $0xb0] sm:$0xff] }
 0x54d   :  { %736 = vmatpush.bf16.msra.mxu3 %v956_v25 }
 0x54e   :  { %v498_v28 = vunpack.c.l.b16 %v485_v26  ;;  %v955_v26 = vld [vmem:[%s1207_s5 + $0xa8] sm:$0xff] }
 0x550   :  { %v499_v29 = vpack.c.b16 %v498_v28, %v497_v27  ;;  %v954_v27 = vld [vmem:[%s1207_s5 + $0xa0] sm:$0xff]  ;;  %v953_v28 = vld [vmem:[%s1207_s5 + $0x98] sm:$0xff] }
 0x551   :  { %737 = vmatpush.bf16.msra.mxu3 %v955_v26 }
 0x552   :  { %500 = vrot.lane.b32.xlu2 %v499_v29, %s967_s2  ;;  %v952_v29 = vld [vmem:[%s1207_s5 + $0x90] sm:$0xff] }
 0x553   :  { %v477_v30 = vpop.f32.mrf.mxu2 }
 0x554   :  { %v486_v31 = vpack.c.bf16 %v477_v30, %v477_v30  ;;  %v951_v30 = vld [vmem:[%s1207_s5 + $0x88] sm:$0xff] }
 0x555   :  { %738 = vmatpush.bf16.msra.mxu3 %v954_v27 }
 0x556   :  { %v504_v34 = vunpack.c.l.b16 %v486_v31 }
 0x559   :  { %739 = vmatpush.bf16.msra.mxu3 %v953_v28 }
 0x55b   :  { %v479_v32 = vpop.f32.mrf.mxu2 }
 0x55c   :  { %v487_v33 = vpack.c.bf16 %v479_v32, %v479_v32 }
 0x55d   :  { %740 = vmatpush.bf16.msra.mxu3 %v952_v29 }
 0x55e   :  { %v505_v35 = vunpack.c.l.b16 %v487_v33 }
 0x560   :  { %v506_v36 = vpack.c.b16 %v505_v35, %v504_v34 }
 0x561   :  { %741 = vmatpush.bf16.msra.mxu3 %v951_v30 }
 0x562   :  { %507 = vrot.lane.b32.xlu0 %v506_v36, %s968_s28 }
 0x5ac   :  { %v501_v46 = vpop.permute.xlu2 %500 }
 0x5b4   :  { %v494_v44 = vpop.permute.xlu1 %493 }
 0x5b5   :  { %v511_v45 = vsel %vm216_vm3, %v456_v11, %v494_v44 }
 0x5b6   :  { %v513_v47 = vsel %vm360_vm4, %v511_v45, %v501_v46 }
 0x5d4   :  { %v508_v48 = vpop.permute.xlu0 %507 }
 0x5d5   :  { %v515_v49 = vsel %vm363_vm5, %v513_v47, %v508_v48 }
 0x5d6   :  { %592 = vmatmul.bf16.vlgmr.msrb.gmra.mxu0 %v515_v49 }
 0x653   :  { %v593_v53 = vpop.f32.mrf.mxu0 }
 0x654   :  { %v594_v54 = vadd.f32 %v593_v53, %v535_v52 }
 0x656   :  { %v598_v55 = vmax.f32 %v594_v54, 0.0 }
 0x658   :  { %v600_v58 = vpack.c.bf16 %v598_v55, %v598_v55 }
 0x65a   :  { %v604_v61 = vunpack.c.l.b16 %v600_v58 }
 0x65b   :  { %v595_v56 = vpop.f32.mrf.mxu0 }
 0x65c   :  { %v596_v57 = vadd.f32 %v595_v56, %v535_v52 }
 0x65e   :  { %v599_v59 = vmax.f32 %v596_v57, 0.0 }
 0x660   :  { %v601_v60 = vpack.c.bf16 %v599_v59, %v599_v59 }
 0x662   :  { %v605_v62 = vunpack.c.l.b16 %v601_v60 }
 0x664   :  { %v606_v63 = vpack.c.b16 %v605_v62, %v604_v61 }
 0x666   :  { %615 = vmatpush.bf16.msra.mxu1 %v606_v63 }
 0x669   :  { %887 = vmatmul.msk.bf16.vlgmr.msra.gmra.mxu1 %vm55_vm0, %v1063_v22 }
 0x679   :  { %888 = vmatmul.msk.bf16.gmra.mxu1 %vm55_vm0, %v1070_v23 }
 0x689   :  { %889 = vmatmul.msk.bf16.gmra.mxu1 %vm55_vm0, %v1077_v24 }
 0x6e6   :  { %v617_v2 = vpop.f32.mrf.mxu1 }
 0x6e7   :  { %v632_v3 = vpack.c.bf16 %v617_v2, %v617_v2 }
 0x6e9   :  { %v640_v6 = vunpack.c.l.b16 %v632_v3 }
 0x6ee   :  { %v619_v4 = vpop.f32.mrf.mxu1 }
 0x6ef   :  { %v633_v5 = vpack.c.bf16 %v619_v4, %v619_v4 }
 0x6f1   :  { %v641_v7 = vunpack.c.l.b16 %v633_v5 }
 0x6f3   :  { %v642_v8 = vpack.c.b16 %v641_v7, %v640_v6 }
 0x6f5   :  { %643 = vrot.lane.b32.xlu1 %v642_v8, %s966_s27 }
 0x6f6   :  { %v622_v9 = vpop.f32.mrf.mxu1 }
 0x6f7   :  { %v634_v10 = vpack.c.bf16 %v622_v9, %v622_v9 }
 0x6f9   :  { %v647_v22 = vunpack.c.l.b16 %v634_v10 }
 0x6fe   :  { %v624_v11 = vpop.f32.mrf.mxu1 }
 0x6ff   :  { %v635_v12 = vpack.c.bf16 %v624_v11, %v624_v11 }
 0x701   :  { %v648_v13 = vunpack.c.l.b16 %v635_v12 }
 0x703   :  { %v649_v14 = vpack.c.b16 %v648_v13, %v647_v22 }
 0x705   :  { %650 = vrot.lane.b32.xlu2 %v649_v14, %s967_s2 }
 0x706   :  { %v627_v23 = vpop.f32.mrf.mxu1 }
 0x707   :  { %v636_v24 = vpack.c.bf16 %v627_v23, %v627_v23 }
 0x709   :  { %v654_v17 = vunpack.c.l.b16 %v636_v24 }
 0x70e   :  { %v629_v15 = vpop.f32.mrf.mxu1 }
 0x70f   :  { %v637_v16 = vpack.c.bf16 %v629_v15, %v629_v15 }
 0x711   :  { %v655_v18 = vunpack.c.l.b16 %v637_v16 }
 0x713   :  { %v656_v19 = vpack.c.b16 %v655_v18, %v654_v17 }
 0x715   :  { %657 = vrot.lane.b32.xlu0 %v656_v19, %s968_s28 }
 0x75f   :  { %v651_v33 = vpop.permute.xlu2 %650 }
 0x767   :  { %v644_v31 = vpop.permute.xlu1 %643 }
 0x768   :  { %v661_v32 = vsel %vm216_vm3, %v606_v63, %v644_v31 }
 0x769   :  { %v663_v34 = vsel %vm360_vm4, %v661_v32, %v651_v33 }
 0x787   :  { %v658_v35 = vpop.permute.xlu0 %657 }
 0x788   :  { %v665_v36 = vsel %vm363_vm5, %v663_v34, %v658_v35 }
 0x789   :  { %742 = vmatmul.bf16.vlgmr.msra.gmra.mxu3 %v665_v36 }
 0x80c   :  { %v743_v40 = vpop.f32.mrf.mxu3 }
 0x80d   :  { %v744_v41 = vadd.f32 %v743_v40, %v685_v39 }
 0x80f   :  { %v748_v42 = vadd.f32 %v744_v41, %v1007_v0 }
 0x811   :  { %750 = vst.msk [vmem:[%s1208_s6] sm:$0xff] %vm147_vm1, %v748_v42 }
 0x814   :  { %v745_v43 = vpop.f32.mrf.mxu3 }
 0x815   :  { %v746_v44 = vadd.f32 %v745_v43, %v685_v39 }
 0x817   :  { %v749_v45 = vadd.f32 %v746_v44, %v1012_v1 }
 0x819   :  { %751 = vst.msk [vmem:[%s1208_s6 + $0x8] sm:$0xff] %vm147_vm1, %v749_v45 }

</bundles_post_ra>
